<compile_context>
chip_gen: v6e
topology: v6e:2x2x1
jax: 0.10.0
libtpu: 0.0.40
codegen_flags: <defaults>
</compile_context>

<pallas_src>
import functools
import math

import jax
import jax.numpy as jnp
from jax.experimental import pallas as pl
from jax.experimental.pallas import tpu as pltpu

# Plain Python float — must NOT be a jnp array (Pallas kernels cannot capture
# traced-array constants).
_INV_SQRT2 = 1.0 / math.sqrt(2.0)

# Constant-index weight/bias blocks are fetched once per call, so
# double-buffering them only wastes VMEM headroom (matters most on v7x, 64 MiB).
if hasattr(pl, "Buffered"):
    _SINGLE_BUFFER = {"pipeline_mode": pl.Buffered(1)}
else:  # older jax: fall back to default double-buffering
    _SINGLE_BUFFER = {}


def _gelu_exact(h):
    # PyTorch nn.GELU() default (approximate='none').  Kept in f32 on purpose
    # (v5e has no bf16 VPU/EUP; f32 erf avoids extra convert traffic).
    return 0.5 * h * (1.0 + jax.lax.erf(h * _INV_SQRT2))


def _const_spec(shape):
    return pl.BlockSpec(shape, lambda i: (0, 0), **_SINGLE_BUFFER)


def _row_spec(tm, width):
    return pl.BlockSpec((tm, width), lambda i: (i, 0))


# -----------------------------------------------------------------------------
# Fused kernel: one_hot(c) * context_mask  +  all four EmbedFC modules.
# -----------------------------------------------------------------------------
def _context_time_embed_kernel(
        c_ref, mask_ref, t_ref,
        w1c_ref, b1c_ref,            # concat contextembed{1,2} layer-1 (n_classes, 3F)
        w1t_ref, b1t_ref,            # concat timeembed{1,2}    layer-1 (1, 3F)
        w2c1_ref, b2c1_ref,          # contextembed1 layer-2 (2F, 2F)
        w2t1_ref, b2t1_ref,          # timeembed1    layer-2 (2F, 2F)
        w2c2_ref, b2c2_ref,          # contextembed2 layer-2 (F, F)
        w2t2_ref, b2t2_ref,          # timeembed2    layer-2 (F, F)
        cemb1_ref, temb1_ref, cemb2_ref, temb2_ref,
        *, compute_dtype):
    n_rows = c_ref.shape[0]
    n_classes = w1c_ref.shape[0]
    f2 = w2c1_ref.shape[0]  # 2 * n_feat

    # Exactly as ContextUnet.forward:
    #   c = one_hot(c); context_mask = -1 * (1 - context_mask); c = c * context_mask
    iota = jax.lax.broadcasted_iota(jnp.int32, (n_rows, n_classes), 1)
    onehot = jnp.where(iota == c_ref[...], 1.0, 0.0).astype(jnp.float32)
    cmask = -1.0 * (1.0 - mask_ref[...])                    # (N, 1)
    cvec = onehot * cmask                                   # (N, n_classes)
    tvec = t_ref[...]                                       # (N, 1)

    # Layer 1, context path: single MXU dot over the concatenated (n_classes, 3F)
    # weight (one push instead of two narrow ones); f32 accumulation, f32 bias+GELU.
    hc = jnp.dot(cvec.astype(compute_dtype), w1c_ref[...],
                 preferred_element_type=jnp.float32) + b1c_ref[...]
    hc = _gelu_exact(hc)                                    # (N, 3F) f32

    # Layer 1, time path: K == 1 -> VPU broadcast outer product (bit-exact,
    # single-term contraction); skips the MXU entirely.
    ht = tvec * w1t_ref[...].astype(jnp.float32) + b1t_ref[...]
    ht = _gelu_exact(ht)                                    # (N, 3F) f32

    def _second(h, w2_ref, b2_ref, o_ref):
        y = jnp.dot(h.astype(compute_dtype), w2_ref[...],
                    preferred_element_type=jnp.float32) + b2_ref[...]
        o_ref[...] = y.astype(o_ref.dtype)

    _second(hc[:, :f2], w2c1_ref, b2c1_ref, cemb1_ref)      # contextembed1
    _second(ht[:, :f2], w2t1_ref, b2t1_ref, temb1_ref)      # timeembed1
    _second(hc[:, f2:], w2c2_ref, b2c2_ref, cemb2_ref)      # contextembed2
    _second(ht[:, f2:], w2t2_ref, b2t2_ref, temb2_ref)      # timeembed2


def prepare_context_time_params(params, *, compute_dtype=jnp.float32):
    """Pack ContextUnet's four EmbedFC param sets for the fused kernel.

    * Concatenates the two context layer-1 weights/biases along the output dim
      (n_classes, 2F)||(n_classes, F) -> (n_classes, 3F); likewise the two
      time layer-1 weights -> (1, 3F).
    * Casts weight matrices to `compute_dtype` (e.g. bf16) ONCE here so the
      per-diffusion-step HBM->VMEM weight DMA is halved; biases stay f32.

    Call once, reuse every timestep.
    """
    (w1c1, b1c1, w2c1, b2c1,
     w1t1, b1t1, w2t1, b2t1,
     w1c2, b1c2, w2c2, b2c2,
     w1t2, b1t2, w2t2, b2t2) = params
    cd = compute_dtype
    w1c = jnp.concatenate([w1c1, w1c2], axis=1).astype(cd)
    b1c = jnp.concatenate([b1c1, b1c2], axis=0).reshape(1, -1).astype(jnp.float32)
    w1t = jnp.concatenate([w1t1, w1t2], axis=1).astype(cd)
    b1t = jnp.concatenate([b1t1, b1t2], axis=0).reshape(1, -1).astype(jnp.float32)
    return (w1c, b1c, w1t, b1t,
            w2c1.astype(cd), b2c1.reshape(1, -1).astype(jnp.float32),
            w2t1.astype(cd), b2t1.reshape(1, -1).astype(jnp.float32),
            w2c2.astype(cd), b2c2.reshape(1, -1).astype(jnp.float32),
            w2t2.astype(cd), b2t2.reshape(1, -1).astype(jnp.float32))


def context_time_embeddings(c, context_mask, t, params=None, *, n_feat,
                            compute_dtype=jnp.float32, row_block=256,
                            packed_params=None):
    """ContextUnet's per-timestep embedding path in ONE pallas_call.

    Returns (cemb1, temb1, cemb2, temb2) with shapes (N, 2F), (N, 2F), (N, F),
    (N, F).  The caller reshapes to (-1, C, 1, 1) as in ContextUnet.forward.

    NOTE: feed the CFG-doubled sampling batch (and any parallel samples) through
    a single call so N >= 8 rows — at N=4 the MXU/stores are heavily underfilled.
    """
    if packed_params is None:
        assert params is not None
        packed_params = prepare_context_time_params(params, compute_dtype=compute_dtype)
    (w1c, b1c, w1t, b1t,
     w2c1, b2c1, w2t1, b2t1, w2c2, b2c2, w2t2, b2t2) = packed_params

    c2d = c.reshape(-1, 1).astype(jnp.int32)
    n = c2d.shape[0]
    mask2d = context_mask.reshape(-1, 1).astype(jnp.float32)
    t2d = t.reshape(-1, 1).astype(jnp.float32)
    assert mask2d.shape[0] == n and t2d.shape[0] == n

    out_shapes = (
        jax.ShapeDtypeStruct((n, 2 * n_feat), jnp.float32),
        jax.ShapeDtypeStruct((n, 2 * n_feat), jnp.float32),
        jax.ShapeDtypeStruct((n, n_feat), jnp.float32),
        jax.ShapeDtypeStruct((n, n_feat), jnp.float32),
    )
    kernel = functools.partial(_context_time_embed_kernel,
                               compute_dtype=compute_dtype)
    weight_args = (w1c, b1c, w1t, b1t,
                   w2c1, b2c1, w2t1, b2t1, w2c2, b2c2, w2t2, b2t2)

    if n <= row_block:
        # Small N (per-step training batch): gridless, fully VMEM-resident.
        vmem = pl.BlockSpec(memory_space=pltpu.MemorySpace.VMEM)
        return pl.pallas_call(
            kernel,
            out_shape=out_shapes,
            in_specs=[vmem] * 15,
            out_specs=(vmem,) * 4,
        )(c2d, mask2d, t2d, *weight_args)

    # Large sampling / CFG batches: 1-D row grid -> DMA/compute pipelining and
    # dual-TensorCore sharding on v7x.  Weights use constant index maps (fetched
    # once) and are single-buffered.
    tm = row_block
    grid = (pl.cdiv(n, tm),)
    in_specs = [
        _row_spec(tm, 1), _row_spec(tm, 1), _row_spec(tm, 1),
        _const_spec(w1c.shape), _const_spec(b1c.shape),
        _const_spec(w1t.shape), _const_spec(b1t.shape),
        _const_spec(w2c1.shape), _const_spec(b2c1.shape),
        _const_spec(w2t1.shape), _const_spec(b2t1.shape),
        _const_spec(w2c2.shape), _const_spec(b2c2.shape),
        _const_spec(w2t2.shape), _const_spec(b2t2.shape),
    ]
    out_specs = (_row_spec(tm, 2 * n_feat), _row_spec(tm, 2 * n_feat),
                 _row_spec(tm, n_feat), _row_spec(tm, n_feat))
    return pl.pallas_call(
        kernel,
        out_shape=out_shapes,
        grid=grid,
        in_specs=in_specs,
        out_specs=out_specs,
        compiler_params=pltpu.CompilerParams(
            dimension_semantics=("parallel",)),
    )(c2d, mask2d, t2d, *weight_args)


# -----------------------------------------------------------------------------
# Generic EmbedFC kernel (standalone reuse at arbitrary N).
# -----------------------------------------------------------------------------
def _embedfc_kernel(x_ref, w1_ref, b1_ref, w2_ref, b2_ref, o_ref, *, compute_dtype):
    x = x_ref[...]
    if x_ref.shape[1] == 1:
        # K == 1 (timeembed-style): VPU broadcast outer product, bit-exact.
        h = x.astype(jnp.float32) * w1_ref[...].astype(jnp.float32) + b1_ref[...]
    else:
        h = jnp.dot(x.astype(compute_dtype), w1_ref[...],
                    preferred_element_type=jnp.float32) + b1_ref[...]
    h = _gelu_exact(h)
    y = jnp.dot(h.astype(compute_dtype), w2_ref[...],
                preferred_element_type=jnp.float32) + b2_ref[...]
    o_ref[...] = y.astype(o_ref.dtype)


def embed_fc(x, w1, b1, w2, b2, *, input_dim, compute_dtype=jnp.float32,
             row_block=1024, vmem_limit_bytes=None):
    """EmbedFC forward: x.view(-1, input_dim) -> Linear -> GELU -> Linear.

    compute_dtype=jnp.bfloat16 is recommended for large-N throughput on v5e
    (bf16-native MXU) at the cost of deviating from PyTorch f32 numerics.
    On v5e, set vmem_limit_bytes explicitly if row_block is pushed past ~2K or
    emb_dim grows (default scoped-VMEM limit is 16 MiB there).
    """
    assert x.size % input_dim == 0, (x.shape, input_dim)
    x2d = x.reshape(-1, input_dim)
    n = x2d.shape[0]
    emb_dim = w2.shape[1]
    w1c = w1.astype(compute_dtype)
    w2c = w2.astype(compute_dtype)
    b1_2d = b1.reshape(1, -1).astype(jnp.float32)
    b2_2d = b2.reshape(1, -1).astype(jnp.float32)
    kernel = functools.partial(_embedfc_kernel, compute_dtype=compute_dtype)

    if n <= row_block:
        # Small N (ContextUnet per-step embeddings): gridless, fully VMEM-resident.
        vmem = pl.BlockSpec(memory_space=pltpu.MemorySpace.VMEM)
        return pl.pallas_call(
            kernel,
            out_shape=jax.ShapeDtypeStruct((n, emb_dim), x.dtype),
            in_specs=[vmem] * 5,
            out_specs=vmem,
        )(x2d, w1c, b1_2d, w2c, b2_2d)

    # Large N: 1-D row grid => double-buffered x/out DMA behind the matmuls and
    # dual-TC sharding via "parallel".  No jnp.pad / out[:n] round-trips: cdiv
    # grid + Pallas masking of the ragged final block's stores.  Since the
    # gridless branch handles n <= row_block, the grid here always has >= 2 steps.
    tm = row_block
    grid = (pl.cdiv(n, tm),)
    return pl.pallas_call(
        kernel,
        out_shape=jax.ShapeDtypeStruct((n, emb_dim), x.dtype),
        grid=grid,
        in_specs=[
            pl.BlockSpec((tm, input_dim), lambda i: (i, 0)),
            _const_spec((input_dim, emb_dim)),
            _const_spec((1, emb_dim)),
            _const_spec((emb_dim, emb_dim)),
            _const_spec((1, emb_dim)),
        ],
        out_specs=pl.BlockSpec((tm, emb_dim), lambda i: (i, 0)),
        compiler_params=pltpu.CompilerParams(
            dimension_semantics=("parallel",),
            vmem_limit_bytes=vmem_limit_bytes),
    )(x2d, w1c, b1_2d, w2c, b2_2d)


# -----------------------------------------------------------------------------
# Pure-JAX references.
# -----------------------------------------------------------------------------
def _ref_embed(x2d, w1, b1, w2, b2):
    h = x2d @ w1 + b1
    h = 0.5 * h * (1.0 + jax.lax.erf(h * _INV_SQRT2))
    return h @ w2 + b2


def _ref_context_time_embeddings(c, context_mask, t, params, *, n_classes):
    (w1c1, b1c1, w2c1, b2c1,
     w1t1, b1t1, w2t1, b2t1,
     w1c2, b1c2, w2c2, b2c2,
     w1t2, b1t2, w2t2, b2t2) = params
    onehot = jax.nn.one_hot(c, n_classes, dtype=jnp.float32)
    mask = context_mask.reshape(-1, 1).astype(jnp.float32)
    cvec = onehot * (-1.0 * (1.0 - mask))
    tvec = t.reshape(-1, 1).astype(jnp.float32)
    return (_ref_embed(cvec, w1c1, b1c1, w2c1, b2c1),
            _ref_embed(tvec, w1t1, b1t1, w2t1, b2t1),
            _ref_embed(cvec, w1c2, b1c2, w2c2, b2c2),
            _ref_embed(tvec, w1t2, b1t2, w2t2, b2t2))


def _linear_params(key, fan_in, fan_out):
    kw, kb = jax.random.split(key)
    lim = 1.0 / math.sqrt(fan_in)
    w = jax.random.uniform(kw, (fan_in, fan_out), jnp.float32, -lim, lim)
    b = jax.random.uniform(kb, (fan_out,), jnp.float32, -lim, lim)
    return w, b


def _embedfc_params(key, input_dim, emb_dim):
    k1, k2 = jax.random.split(key)
    w1, b1 = _linear_params(k1, input_dim, emb_dim)
    w2, b2 = _linear_params(k2, emb_dim, emb_dim)
    return w1, b1, w2, b2


if __name__ == "__main__":
    key = jax.random.PRNGKey(0)
    n_feat = 128
    n_classes = 10
    batch = 4

    keys = jax.random.split(key, 16)

    params = (_embedfc_params(keys[3], n_classes, 2 * n_feat)    # contextembed1
              + _embedfc_params(keys[4], 1, 2 * n_feat)          # timeembed1
              + _embedfc_params(keys[5], n_classes, n_feat)      # contextembed2
              + _embedfc_params(keys[6], 1, n_feat))             # timeembed2

    # ---- fused ContextUnet embedding path, small batch (gridless), f32 default
    c = jax.random.randint(keys[0], (batch,), 0, n_classes)
    context_mask = jax.random.bernoulli(keys[1], 0.5, (batch,)).astype(jnp.float32)
    t = jax.random.uniform(keys[2], (batch, 1, 1, 1), jnp.float32)

    packed_f32 = prepare_context_time_params(params)             # prep once
    outs = jax.block_until_ready(
        context_time_embeddings(c, context_mask, t, n_feat=n_feat,
                                packed_params=packed_f32))
    refs = _ref_context_time_embeddings(c, context_mask, t, params,
                                        n_classes=n_classes)
    for o, r in zip(outs, refs):
        assert o.shape == r.shape, (o.shape, r.shape)
        assert jnp.allclose(o, r, atol=1e-4, rtol=1e-4), "fused embed mismatch"

    # ---- fused path, large sampling/CFG batch (row grid, parallel semantics)
    big = 512
    c_b = jax.random.randint(keys[10], (big,), 0, n_classes)
    mask_b = jax.random.bernoulli(keys[11], 0.5, (big,)).astype(jnp.float32)
    t_b = jax.random.uniform(keys[12], (big, 1, 1, 1), jnp.float32)
    outs_b = jax.block_until_ready(
        context_time_embeddings(c_b, mask_b, t_b, n_feat=n_feat,
                                packed_params=packed_f32, row_block=128))
    refs_b = _ref_context_time_embeddings(c_b, mask_b, t_b, params,
                                          n_classes=n_classes)
    for o, r in zip(outs_b, refs_b):
        assert jnp.allclose(o, r, atol=1e-4, rtol=1e-4), "fused grid embed mismatch"

    # ---- fused path, bf16 weight shipping (opt-in numerics change)
    packed_bf16 = prepare_context_time_params(params, compute_dtype=jnp.bfloat16)
    outs_bf = jax.block_until_ready(
        context_time_embeddings(c, context_mask, t, n_feat=n_feat,
                                packed_params=packed_bf16,
                                compute_dtype=jnp.bfloat16))
    for o, r in zip(outs_bf, refs):
        assert jnp.allclose(o, r, atol=5e-2, rtol=5e-2), "fused bf16 embed mismatch"

    # ---- standalone EmbedFC, small N (gridless path)
    input_dim, emb_dim = 64, 128
    w1, b1, w2, b2 = _embedfc_params(keys[7], input_dim, emb_dim)
    x_small = jax.random.normal(keys[8], (8, 4, 16), jnp.float32)
    out_s = jax.block_until_ready(
        embed_fc(x_small, w1, b1, w2, b2, input_dim=input_dim))
    ref_s = _ref_embed(x_small.reshape(-1, input_dim), w1, b1, w2, b2)
    assert jnp.allclose(out_s, ref_s, atol=1e-4, rtol=1e-4), "small embed_fc mismatch"

    # ---- standalone EmbedFC, input_dim == 1 (VPU broadcast branch, timeembed-style)
    w1t_, b1t_, w2t_, b2t_ = _embedfc_params(keys[13], 1, emb_dim)
    x_time = jax.random.uniform(keys[14], (16, 1, 1, 1), jnp.float32)
    out_t = jax.block_until_ready(
        embed_fc(x_time, w1t_, b1t_, w2t_, b2t_, input_dim=1))
    ref_t = _ref_embed(x_time.reshape(-1, 1), w1t_, b1t_, w2t_, b2t_)
    assert jnp.allclose(out_t, ref_t, atol=1e-4, rtol=1e-4), "k1 embed_fc mismatch"

    # ---- standalone EmbedFC, large N (row grid, parallel semantics), f32
    x_large = jax.random.normal(keys[9], (2048, input_dim), jnp.float32)
    out_l = jax.block_until_ready(
        embed_fc(x_large, w1, b1, w2, b2, input_dim=input_dim, row_block=512))
    ref_l = _ref_embed(x_large, w1, b1, w2, b2)
    assert jnp.allclose(out_l, ref_l, atol=1e-4, rtol=1e-4), "grid embed_fc mismatch"

    # ---- same, bf16 MXU inputs with f32 accumulation (opt-in numerics change)
    out_bf = jax.block_until_ready(
        embed_fc(x_large, w1, b1, w2, b2, input_dim=input_dim,
                 compute_dtype=jnp.bfloat16, row_block=1024))
    assert jnp.allclose(out_bf, ref_l, atol=5e-2, rtol=5e-2), "bf16 embed_fc mismatch"

    print("KERNEL_OK")
</pallas_src>

<mosaic_0001>
module attributes {stable_mosaic.version = 11 : i64} {
  func.func @_context_time_embed_kernel(%arg0: memref<4x1xi32, #tpu.memory_space<vmem>>, %arg1: memref<4x1xf32, #tpu.memory_space<vmem>>, %arg2: memref<4x1xf32, #tpu.memory_space<vmem>>, %arg3: memref<10x384xf32, #tpu.memory_space<vmem>>, %arg4: memref<1x384xf32, #tpu.memory_space<vmem>>, %arg5: memref<1x384xf32, #tpu.memory_space<vmem>>, %arg6: memref<1x384xf32, #tpu.memory_space<vmem>>, %arg7: memref<256x256xf32, #tpu.memory_space<vmem>>, %arg8: memref<1x256xf32, #tpu.memory_space<vmem>>, %arg9: memref<256x256xf32, #tpu.memory_space<vmem>>, %arg10: memref<1x256xf32, #tpu.memory_space<vmem>>, %arg11: memref<128x128xf32, #tpu.memory_space<vmem>>, %arg12: memref<1x128xf32, #tpu.memory_space<vmem>>, %arg13: memref<128x128xf32, #tpu.memory_space<vmem>>, %arg14: memref<1x128xf32, #tpu.memory_space<vmem>>, %arg15: memref<4x256xf32, #tpu.memory_space<vmem>>, %arg16: memref<4x256xf32, #tpu.memory_space<vmem>>, %arg17: memref<4x128xf32, #tpu.memory_space<vmem>>, %arg18: memref<4x128xf32, #tpu.memory_space<vmem>>) attributes {dimension_semantics = [], scalar_prefetch = 0 : i64, scratch_operands = 0 : i64, tpu.core_type = #tpu.core_type<tc>} {
    %0 = tpu.iota {dimensions = array<i32: 1>} : vector<4x10xi32>
    %c0 = arith.constant 0 : index
    %c0_0 = arith.constant 0 : index
    %1 = vector.load %arg0[%c0, %c0_0] : memref<4x1xi32, #tpu.memory_space<vmem>>, vector<4x1xi32>
    %2 = vector.broadcast %1 : vector<4x1xi32> to vector<4x10xi32>
    %3 = arith.cmpi eq, %0, %2 : vector<4x10xi32>
    %cst = arith.constant 1.000000e+00 : f32
    %cst_1 = arith.constant 0.000000e+00 : f32
    %4 = vector.broadcast %cst : f32 to vector<4x10xf32>
    %5 = vector.broadcast %cst_1 : f32 to vector<4x10xf32>
    %6 = arith.select %3, %4, %5 : vector<4x10xi1>, vector<4x10xf32>
    %c0_2 = arith.constant 0 : index
    %c0_3 = arith.constant 0 : index
    %7 = vector.load %arg1[%c0_2, %c0_3] : memref<4x1xf32, #tpu.memory_space<vmem>>, vector<4x1xf32>
    %cst_4 = arith.constant 1.000000e+00 : f32
    %8 = vector.broadcast %cst_4 : f32 to vector<4x1xf32>
    %9 = arith.subf %8, %7 : vector<4x1xf32>
    %cst_5 = arith.constant -1.000000e+00 : f32
    %10 = vector.broadcast %cst_5 : f32 to vector<4x1xf32>
    %11 = arith.mulf %10, %9 : vector<4x1xf32>
    %12 = vector.broadcast %11 : vector<4x1xf32> to vector<4x10xf32>
    %13 = arith.mulf %6, %12 : vector<4x10xf32>
    %c0_6 = arith.constant 0 : index
    %c0_7 = arith.constant 0 : index
    %14 = vector.load %arg2[%c0_6, %c0_7] : memref<4x1xf32, #tpu.memory_space<vmem>>, vector<4x1xf32>
    %c0_8 = arith.constant 0 : index
    %c0_9 = arith.constant 0 : index
    %15 = vector.load %arg3[%c0_8, %c0_9] : memref<10x384xf32, #tpu.memory_space<vmem>>, vector<10x384xf32>
    %cst_10 = arith.constant dense<0.000000e+00> : vector<4x384xf32>
    %16 = tpu.matmul %13, %15, %cst_10 {dimension_numbers = #tpu.dot_dimension_numbers<[1], [0], [0], [1], [0, 0, 1, 1], [], []>} : vector<4x10xf32>, vector<10x384xf32>, vector<4x384xf32> -> vector<4x384xf32>
    %c0_11 = arith.constant 0 : index
    %c0_12 = arith.constant 0 : index
    %17 = vector.load %arg4[%c0_11, %c0_12] : memref<1x384xf32, #tpu.memory_space<vmem>>, vector<1x384xf32>
    %18 = vector.broadcast %17 : vector<1x384xf32> to vector<4x384xf32>
    %19 = arith.addf %16, %18 : vector<4x384xf32>
    %cst_13 = arith.constant 5.000000e-01 : f32
    %20 = vector.broadcast %cst_13 : f32 to vector<4x384xf32>
    %21 = arith.mulf %20, %19 : vector<4x384xf32>
    %cst_14 = arith.constant 0.707106769 : f32
    %22 = vector.broadcast %cst_14 : f32 to vector<4x384xf32>
    %23 = arith.mulf %19, %22 : vector<4x384xf32>
    %24 = math.erf %23 : vector<4x384xf32>
    %cst_15 = arith.constant 1.000000e+00 : f32
    %25 = vector.broadcast %cst_15 : f32 to vector<4x384xf32>
    %26 = arith.addf %25, %24 : vector<4x384xf32>
    %27 = arith.mulf %21, %26 : vector<4x384xf32>
    %c0_16 = arith.constant 0 : index
    %c0_17 = arith.constant 0 : index
    %28 = vector.load %arg5[%c0_16, %c0_17] : memref<1x384xf32, #tpu.memory_space<vmem>>, vector<1x384xf32>
    %29 = vector.broadcast %14 : vector<4x1xf32> to vector<4x384xf32>
    %30 = vector.broadcast %28 : vector<1x384xf32> to vector<4x384xf32>
    %31 = arith.mulf %29, %30 : vector<4x384xf32>
    %c0_18 = arith.constant 0 : index
    %c0_19 = arith.constant 0 : index
    %32 = vector.load %arg6[%c0_18, %c0_19] : memref<1x384xf32, #tpu.memory_space<vmem>>, vector<1x384xf32>
    %33 = vector.broadcast %32 : vector<1x384xf32> to vector<4x384xf32>
    %34 = arith.addf %31, %33 : vector<4x384xf32>
    %cst_20 = arith.constant 5.000000e-01 : f32
    %35 = vector.broadcast %cst_20 : f32 to vector<4x384xf32>
    %36 = arith.mulf %35, %34 : vector<4x384xf32>
    %cst_21 = arith.constant 0.707106769 : f32
    %37 = vector.broadcast %cst_21 : f32 to vector<4x384xf32>
    %38 = arith.mulf %34, %37 : vector<4x384xf32>
    %39 = math.erf %38 : vector<4x384xf32>
    %cst_22 = arith.constant 1.000000e+00 : f32
    %40 = vector.broadcast %cst_22 : f32 to vector<4x384xf32>
    %41 = arith.addf %40, %39 : vector<4x384xf32>
    %42 = arith.mulf %36, %41 : vector<4x384xf32>
    %43 = vector.extract_strided_slice %27 {offsets = [0, 0], sizes = [4, 256], strides = [1, 1]} : vector<4x384xf32> to vector<4x256xf32>
    %c0_23 = arith.constant 0 : index
    %c0_24 = arith.constant 0 : index
    %44 = vector.load %arg7[%c0_23, %c0_24] : memref<256x256xf32, #tpu.memory_space<vmem>>, vector<256x256xf32>
    %cst_25 = arith.constant dense<0.000000e+00> : vector<4x256xf32>
    %45 = tpu.matmul %43, %44, %cst_25 {dimension_numbers = #tpu.dot_dimension_numbers<[1], [0], [0], [1], [0, 0, 1, 1], [], []>} : vector<4x256xf32>, vector<256x256xf32>, vector<4x256xf32> -> vector<4x256xf32>
    %c0_26 = arith.constant 0 : index
    %c0_27 = arith.constant 0 : index
    %46 = vector.load %arg8[%c0_26, %c0_27] : memref<1x256xf32, #tpu.memory_space<vmem>>, vector<1x256xf32>
    %47 = vector.broadcast %46 : vector<1x256xf32> to vector<4x256xf32>
    %48 = arith.addf %45, %47 : vector<4x256xf32>
    %c0_28 = arith.constant 0 : index
    %c0_29 = arith.constant 0 : index
    %49 = vector.load %arg15[%c0_28, %c0_29] : memref<4x256xf32, #tpu.memory_space<vmem>>, vector<4x256xf32>
    tpu.vector_store %arg15[%c0_28, %c0_29], %48 {strides = array<i32>} : memref<4x256xf32, #tpu.memory_space<vmem>>, vector<4x256xf32>,
    %50 = vector.extract_strided_slice %42 {offsets = [0, 0], sizes = [4, 256], strides = [1, 1]} : vector<4x384xf32> to vector<4x256xf32>
    %c0_30 = arith.constant 0 : index
    %c0_31 = arith.constant 0 : index
    %51 = vector.load %arg9[%c0_30, %c0_31] : memref<256x256xf32, #tpu.memory_space<vmem>>, vector<256x256xf32>
    %cst_32 = arith.constant dense<0.000000e+00> : vector<4x256xf32>
    %52 = tpu.matmul %50, %51, %cst_32 {dimension_numbers = #tpu.dot_dimension_numbers<[1], [0], [0], [1], [0, 0, 1, 1], [], []>} : vector<4x256xf32>, vector<256x256xf32>, vector<4x256xf32> -> vector<4x256xf32>
    %c0_33 = arith.constant 0 : index
    %c0_34 = arith.constant 0 : index
    %53 = vector.load %arg10[%c0_33, %c0_34] : memref<1x256xf32, #tpu.memory_space<vmem>>, vector<1x256xf32>
    %54 = vector.broadcast %53 : vector<1x256xf32> to vector<4x256xf32>
    %55 = arith.addf %52, %54 : vector<4x256xf32>
    %c0_35 = arith.constant 0 : index
    %c0_36 = arith.constant 0 : index
    %56 = vector.load %arg16[%c0_35, %c0_36] : memref<4x256xf32, #tpu.memory_space<vmem>>, vector<4x256xf32>
    tpu.vector_store %arg16[%c0_35, %c0_36], %55 {strides = array<i32>} : memref<4x256xf32, #tpu.memory_space<vmem>>, vector<4x256xf32>,
    %57 = vector.extract_strided_slice %27 {offsets = [0, 256], sizes = [4, 128], strides = [1, 1]} : vector<4x384xf32> to vector<4x128xf32>
    %c0_37 = arith.constant 0 : index
    %c0_38 = arith.constant 0 : index
    %58 = vector.load %arg11[%c0_37, %c0_38] : memref<128x128xf32, #tpu.memory_space<vmem>>, vector<128x128xf32>
    %cst_39 = arith.constant dense<0.000000e+00> : vector<4x128xf32>
    %59 = tpu.matmul %57, %58, %cst_39 {dimension_numbers = #tpu.dot_dimension_numbers<[1], [0], [0], [1], [0, 0, 1, 1], [], []>} : vector<4x128xf32>, vector<128x128xf32>, vector<4x128xf32> -> vector<4x128xf32>
    %c0_40 = arith.constant 0 : index
    %c0_41 = arith.constant 0 : index
    %60 = vector.load %arg12[%c0_40, %c0_41] : memref<1x128xf32, #tpu.memory_space<vmem>>, vector<1x128xf32>
    %61 = vector.broadcast %60 : vector<1x128xf32> to vector<4x128xf32>
    %62 = arith.addf %59, %61 : vector<4x128xf32>
    %c0_42 = arith.constant 0 : index
    %c0_43 = arith.constant 0 : index
    %63 = vector.load %arg17[%c0_42, %c0_43] : memref<4x128xf32, #tpu.memory_space<vmem>>, vector<4x128xf32>
    tpu.vector_store %arg17[%c0_42, %c0_43], %62 {strides = array<i32>} : memref<4x128xf32, #tpu.memory_space<vmem>>, vector<4x128xf32>,
    %64 = vector.extract_strided_slice %42 {offsets = [0, 256], sizes = [4, 128], strides = [1, 1]} : vector<4x384xf32> to vector<4x128xf32>
    %c0_44 = arith.constant 0 : index
    %c0_45 = arith.constant 0 : index
    %65 = vector.load %arg13[%c0_44, %c0_45] : memref<128x128xf32, #tpu.memory_space<vmem>>, vector<128x128xf32>
    %cst_46 = arith.constant dense<0.000000e+00> : vector<4x128xf32>
    %66 = tpu.matmul %64, %65, %cst_46 {dimension_numbers = #tpu.dot_dimension_numbers<[1], [0], [0], [1], [0, 0, 1, 1], [], []>} : vector<4x128xf32>, vector<128x128xf32>, vector<4x128xf32> -> vector<4x128xf32>
    %c0_47 = arith.constant 0 : index
    %c0_48 = arith.constant 0 : index
    %67 = vector.load %arg14[%c0_47, %c0_48] : memref<1x128xf32, #tpu.memory_space<vmem>>, vector<1x128xf32>
    %68 = vector.broadcast %67 : vector<1x128xf32> to vector<4x128xf32>
    %69 = arith.addf %66, %68 : vector<4x128xf32>
    %c0_49 = arith.constant 0 : index
    %c0_50 = arith.constant 0 : index
    %70 = vector.load %arg18[%c0_49, %c0_50] : memref<4x128xf32, #tpu.memory_space<vmem>>, vector<4x128xf32>
    tpu.vector_store %arg18[%c0_49, %c0_50], %69 {strides = array<i32>} : memref<4x128xf32, #tpu.memory_space<vmem>>, vector<4x128xf32>,
    return
  }
}

</mosaic_0001>

<bundles_post_ra>
// kernel: tpu_custom_call.1
= control target key start
LH: loop header
LB: loop body
LE: loop exit
PB: predicated region body
PF: predicated region fallthrough
CT: control target
= control target key end

     0   :  { %s1562_s0 = inlined_call_operand.vmem [shape: s32[4,1], index: 0, kind: input, shape index: {}]   ;;  %s1563_s1 = inlined_call_operand.vmem [shape: f32[4,1], index: 1, kind: input, shape index: {}]   ;;  %s1564_s2 = inlined_call_operand.vmem [shape: f32[4,1], index: 2, kind: input, shape index: {}]   ;;  %s1565_s3 = inlined_call_operand.hbm [shape: f32[10,384], index: 3, kind: input, shape index: {}]   ;;  %s1566_s4 = inlined_call_operand.vmem [shape: f32[1,384], index: 4, kind: input, shape index: {}]   ;;  %s1567_s5 = inlined_call_operand.vmem [shape: f32[1,384], index: 5, kind: input, shape index: {}]   ;;  %s1568_s6 = inlined_call_operand.vmem [shape: f32[1,384], index: 6, kind: input, shape index: {}]   ;;  %s1569_s7 = inlined_call_operand.hbm [shape: f32[256,256], index: 7, kind: input, shape index: {}]   ;;  %s1570_s8 = inlined_call_operand.vmem [shape: f32[1,256], index: 8, kind: input, shape index: {}]   ;;  %s1571_s9 = inlined_call_operand.hbm [shape: f32[256,256], index: 9, kind: input, shape index: {}]   ;;  %s1572_s10 = inlined_call_operand.vmem [shape: f32[1,256], index: 10, kind: input, shape index: {}]   ;;  %s1573_s11 = inlined_call_operand.hbm [shape: f32[128,128], index: 11, kind: input, shape index: {}]   ;;  %s1574_s12 = inlined_call_operand.vmem [shape: f32[1,128], index: 12, kind: input, shape index: {}]   ;;  %s1575_s13 = inlined_call_operand.hbm [shape: f32[128,128], index: 13, kind: input, shape index: {}]   ;;  %s1576_s14 = inlined_call_operand.vmem [shape: f32[1,128], index: 14, kind: input, shape index: {}]   ;;  %s1577_s15 = inlined_call_operand.hbm [shape: f32[4,256], index: 15, kind: output, shape index: {0}]   ;;  %s1578_s16 = inlined_call_operand.hbm [shape: f32[4,256], index: 16, kind: output, shape index: {1}]   ;;  %s1579_s17 = inlined_call_operand.hbm [shape: f32[4,128], index: 17, kind: output, shape index: {2}]   ;;  %s1580_s18 = inlined_call_operand.hbm [shape: f32[4,128], index: 18, kind: output, shape index: {3}]  }
   0x1   :  { %1581 = sst [smem:[#allocation23_spill]] %s1562_s0 }
   0x2   :  { %1582 = sst [smem:[#allocation24_spill]] %s1563_s1 }
   0x3   :  { %1583 = sst [smem:[#allocation25_spill]] %s1564_s2 }
   0x4   :  { %24 = vsyncpa [#allocation3], 0 }
   0x5   :  { %25 = vsyncpa [#allocation6], 0 }
   0x6   :  { %26 = vsyncpa [#allocation9], 0 }
   0x7   :  { %27 = vsyncpa [#allocation4], 0 }
   0x8   :  { %28 = vsyncpa [#allocation13], 0 }
   0x9   :  { %29 = vsyncpa [#allocation16], 0  ;;  %s1291_s27 = smov [#allocation5]  }
   0xa   :  { %s59_s28 = sshll.u32 %s1291_s27, 4  ;;  %s60_s28 = int_to_ptr.vmem [resolvable:$true] %s59_s28 }
   0xb   :  { %s1107_s29 = scalar_lea.vmem %s60_s28, 8192  ;;  %p1112_p1 = scmp.lt.s32.totalorder %s60_s28, %s60_s28 }
   0xc   :  { %p1108_p0 = scmp.ne.s32.totalorder %s60_s28, %s1107_s29  ;;  %p1113_p2 = scmp.lt.s32.totalorder %s1107_s29, %s1107_s29 }
   0xe   :  { %p1114_p3 = por %p1113_p2, %p1112_p1 }
  0x10   :  { %p1115_p4 = pnand %p1114_p3, %p1108_p0 }
  0x12   :  { %1118 = shalt.err (!%p1115_p4)
}
  0x13   :  { %s1292_s30 = smov 256   ;;  %s1293_s0 = smov 16  }
  0x14   :  { %65 = dma.hbm_to_vmem [thread:$0]  %s1569_s7, 8192, %s60_s28, [#allocation6], %s1292_s30, %s1292_s30, %s1293_s0  }
  0x15   :  { %s1294_s20 = smov [#allocation8]  }
  0x16   :  { %s87_s21 = sshll.u32 %s1294_s20, 4  ;;  %s88_s21 = int_to_ptr.vmem [resolvable:$true] %s87_s21 }
  0x17   :  { %s1127_s22 = scalar_lea.vmem %s88_s21, 2048  ;;  %p1132_p6 = scmp.lt.s32.totalorder %s88_s21, %s88_s21 }
  0x18   :  { %p1128_p5 = scmp.ne.s32.totalorder %s88_s21, %s1127_s22  ;;  %p1133_p7 = scmp.lt.s32.totalorder %s1127_s22, %s1127_s22 }
  0x1a   :  { %p1134_p8 = por %p1133_p7, %p1132_p6 }
  0x1c   :  { %p1135_p9 = pnand %p1134_p8, %p1128_p5 }
  0x1e   :  { %1138 = shalt.err (!%p1135_p9)
}
  0x1f   :  { %s1295_s2 = smov 128   ;;  %s1296_s23 = smov 8  }
  0x20   :  { %93 = dma.hbm_to_vmem [thread:$0]  %s1573_s11, 2048, %s88_s21, [#allocation9], %s1295_s2, %s1295_s2, %s1296_s23  }
  0x21   :  { %s1297_s7 = smov [#allocation2]  }
  0x22   :  { %s41_s26 = sshll.u32 %s1297_s7, 4  ;;  %s42_s26 = int_to_ptr.vmem [resolvable:$true] %s41_s26 }
  0x23   :  { %s1147_s27 = scalar_lea.vmem %s42_s26, 768  ;;  %p1152_p11 = scmp.lt.s32.totalorder %s42_s26, %s42_s26 }
  0x24   :  { %p1148_p10 = scmp.ne.s32.totalorder %s42_s26, %s1147_s27  ;;  %p1153_p12 = scmp.lt.s32.totalorder %s1147_s27, %s1147_s27 }
  0x26   :  { %p1154_p13 = por %p1153_p12, %p1152_p11 }
  0x28   :  { %p1155_p0 = pnand %p1154_p13, %p1148_p10 }
  0x2a   :  { %1158 = shalt.err (!%p1155_p0)
}
  0x2b   :  { %s1298_s28 = smov 384   ;;  %s1299_s29 = smov 24  }
  0x2c   :  { %47 = dma.hbm_to_vmem [thread:$0]  %s1565_s3, 768, %s42_s26, [#allocation3], %s1298_s28, %s1298_s28, %s1299_s29  }
  0x2d   :  { %s1300_s20 = smov [#allocation7]   ;;  %s1301_s11 = smov [#allocation10]  }
  0x2e   :  { %s73_s22 = sshll.u32 %s1300_s20, 4  ;;  %s101_s21 = sshll.u32 %s1301_s11, 4  ;;  %s74_s22 = int_to_ptr.vmem [resolvable:$true] %s73_s22  ;;  %s102_s21 = int_to_ptr.vmem [resolvable:$true] %s101_s21 }
  0x2f   :  { %s1167_s24 = scalar_lea.vmem %s74_s22, 8192  ;;  %p1172_p2 = scmp.lt.s32.totalorder %s74_s22, %s74_s22 }
  0x30   :  { %p1168_p1 = scmp.ne.s32.totalorder %s74_s22, %s1167_s24  ;;  %p1173_p3 = scmp.lt.s32.totalorder %s1167_s24, %s1167_s24 }
  0x32   :  { %p1174_p4 = por %p1173_p3, %p1172_p2 }
  0x34   :  { %p1175_p5 = pnand %p1174_p4, %p1168_p1 }
  0x36   :  { %1178 = shalt.err (!%p1175_p5)
}
  0x37   :  { %79 = dma.hbm_to_vmem [thread:$0]  %s1571_s9, 8192, %s74_s22, [#allocation6], %s1292_s30, %s1292_s30, %s1293_s0  }
  0x38   :  { %s1187_s3 = scalar_lea.vmem %s102_s21, 2048  ;;  %p1192_p7 = scmp.lt.s32.totalorder %s102_s21, %s102_s21 }
  0x39   :  { %p1188_p6 = scmp.ne.s32.totalorder %s102_s21, %s1187_s3  ;;  %p1193_p8 = scmp.lt.s32.totalorder %s1187_s3, %s1187_s3 }
  0x3b   :  { %p1194_p9 = por %p1193_p8, %p1192_p7 }
  0x3d   :  { %p1195_p10 = pnand %p1194_p9, %p1188_p6 }
  0x3f   :  { %1198 = shalt.err (!%p1195_p10)
}
  0x40   :  { %107 = dma.hbm_to_vmem [thread:$0]  %s1575_s13, 2048, %s102_s21, [#allocation9], %s1295_s2, %s1295_s2, %s1296_s23  }
  0x41   :  { %1279 = dma.done.wait [#allocation3], 768  }
  0x42   :  { %1280 = vsyncadd [#allocation3], 4294966528 }
  0x43   :  { %1281 = dma.done.wait [#allocation6], 16384  }
  0x44   :  { %1282 = vsyncadd [#allocation6], 4294950912 }
  0x45   :  { %1283 = dma.done.wait [#allocation9], 4096  }
  0x46   :  { %1284 = vsyncadd [#allocation9], 4294963200  ;;  %v1302_v0 = vmov 0   ;;  %vm170_vm0 = vcmask 1041408   ;;  %v1303_v1 = vmov 0.0   ;;  %s1584_s0 = sld [smem:[#allocation23_spill]]  ;;  %v125_v15 = vlaneseq }
  0x47   :  { %1085 = vset.pattern.permute.xlu0 %v1302_v0  ;;  %1086 = vset.pattern.permute.xlu1 %v1302_v0  ;;  %s1585_s23 = sld [smem:[#allocation24_spill]]  ;;  %v147_v4 = vld [vmem:[#allocation2 + $0x20] sm:$0x3]  ;;  %v146_v6 = vld [vmem:[#allocation2 + $0x18] sm:$0x3]  ;;  %v144_v8 = vld [vmem:[#allocation2 + $0x8] sm:$0xff] }
  0x48   :  { %990 = vmatprep.subr.mxu1 %v1303_v1  ;;  %244 = vmatprep.mubr.f32.mxu0 %v1303_v1  ;;  %v148_v7 = vld [vmem:[#allocation2 + $0x28] sm:$0x3]  ;;  %v143_v9 = vld [vmem:[#allocation2] sm:$0xff]  ;;  %v145_v10 = vld [vmem:[#allocation2 + $0x10] sm:$0xff]  ;;  %s1586_s19 = sld [smem:[#allocation25_spill]]  ;;  %vm1304_vm1 = vmmov 0  }
  0x49   :  { %946 = vmatprep.subr.msk.mxu0 %vm170_vm0, %v147_v4  ;;  %991 = vmatpush3.msk.msra.mxu1 %vm170_vm0, %v148_v7  ;;  %v579_v13 = vld [vmem:[#allocation7 + $0xf8] sm:$0xff]  ;;  %v1445_v16 = vshrl.u32 %v125_v15, 7  ;;  %v126_v17 = vand.u32 127, %v125_v15  ;;  %v1456_v20 = vld [vmem:[%s1567_s5] sm:$0x7]  ;;  %vm166_vm3 = vcmask 80896  }
  0x4a   :  { %947 = vmatpush1.msk.msra.mxu0 %vm170_vm0, %v146_v6  ;;  %992 = vmatprep.subr.mxu1 %v1303_v1  ;;  %v427_v14 = vld [vmem:[#allocation5 + $0xf8] sm:$0xff]  ;;  %v1461_v22 = vld [vmem:[%s1568_s6] sm:$0x7]  ;;  %v577_v33 = vld [vmem:[#allocation7 + $0xe8] sm:$0xff] }
  0x4b   :  { %210 = vmatprep.subr.mxu0 %v144_v8  ;;  %993 = vmatpush3.msra.mxu1 %v145_v10  ;;  %v1448_v18 = vsub.s32 1, %v1445_v16  ;;  %v1451_v19 = vsub.s32 2, %v1445_v16  ;;  %v578_v30 = vld [vmem:[#allocation7 + $0xf0] sm:$0xff]  ;;  %v425_v36 = vld [vmem:[#allocation5 + $0xe8] sm:$0xff]  ;;  %v576_v37 = vld [vmem:[#allocation7 + $0xe0] sm:$0xff] }
  0x4c   :  { %v127_v2 = vld [vmem:[%s1584_s0] sm:$0xf]  ;;  %211 = vmatpush1.msra.mxu0 %v143_v9  ;;  %994 = vmatprep.mubr.msk.f32.mxu1 %vm1304_vm1, %v1303_v1  ;;  %v424_v38 = vld [vmem:[#allocation5 + $0xe0] sm:$0xff]  ;;  %v575_v39 = vld [vmem:[#allocation7 + $0xd8] sm:$0xff] }
  0x4d   :  { %v133_v3 = vld [vmem:[%s1585_s23] sm:$0xf]  ;;  %129 = vperm.xlu0 %1085, %v127_v2   ;;  %624 = vmatprep.subr.mxu1 %v579_v13  ;;  %v350_v23 = vrot.slane %v1456_v20, %v1448_v18  ;;  %v354_v24 = vrot.slane %v1456_v20, %v1451_v19  ;;  %v370_v27 = vrot.slane %v1461_v22, %v1448_v18  ;;  %v423_v42 = vld [vmem:[#allocation5 + $0xd8] sm:$0xff]  ;;  %v573_v45 = vld [vmem:[#allocation7 + $0xc8] sm:$0xff] }
  0x4e   :  { %v134_v5 = vsub.f32 1.0, %v133_v3  ;;  %v142_v12 = vld [vmem:[%s1586_s19] sm:$0xf]  ;;  %472 = vmatprep.subr.mxu0 %v427_v14  ;;  %v374_v28 = vrot.slane %v1461_v22, %v1451_v19  ;;  %v421_v46 = vld [vmem:[#allocation5 + $0xc8] sm:$0xff]  ;;  %v572_v47 = vld [vmem:[#allocation7 + $0xc0] sm:$0xff] }
  0x4f   :  { %339 = vperm.xlu1 %1086, %v142_v12   ;;  %v426_v32 = vld [vmem:[#allocation5 + $0xf0] sm:$0xff]  ;;  %v420_v49 = vld [vmem:[#allocation5 + $0xc0] sm:$0xff]  ;;  %v571_v50 = vld [vmem:[#allocation7 + $0xb8] sm:$0xff] }
  0x50   :  { %v135_v11 = vmul.f32 -1.0, %v134_v5  ;;  %v574_v43 = vld [vmem:[#allocation7 + $0xd0] sm:$0xff]  ;;  %v419_v51 = vld [vmem:[#allocation5 + $0xb8] sm:$0xff]  ;;  %v569_v54 = vld [vmem:[#allocation7 + $0xa8] sm:$0xff] }
  0x51   :  { %v422_v44 = vld [vmem:[#allocation5 + $0xd0] sm:$0xff]  ;;  %v417_v55 = vld [vmem:[#allocation5 + $0xa8] sm:$0xff]  ;;  %v568_v56 = vld [vmem:[#allocation7 + $0xa0] sm:$0xff] }
  0x52   :  { %138 = vperm.xlu0 %1085, %v135_v11   ;;  %v570_v52 = vld [vmem:[#allocation7 + $0xb0] sm:$0xff]  ;;  %v416_v57 = vld [vmem:[#allocation5 + $0xa0] sm:$0xff]  ;;  %v567_v58 = vld [vmem:[#allocation7 + $0x98] sm:$0xff] }
  0x53   :  { %v418_v53 = vld [vmem:[#allocation5 + $0xb0] sm:$0xff]  ;;  %v415_v59 = vld [vmem:[#allocation5 + $0x98] sm:$0xff]  ;;  %v565_v62 = vld [vmem:[#allocation7 + $0x88] sm:$0xff] }
  0x54   :  { %v566_v60 = vld [vmem:[#allocation7 + $0x90] sm:$0xff]  ;;  %v413_v63 = vld [vmem:[#allocation5 + $0x88] sm:$0xff]  ;;  %v564_v0 = vld [vmem:[#allocation7 + $0x80] sm:$0xff] }
  0x55   :  { %v414_v61 = vld [vmem:[#allocation5 + $0x90] sm:$0xff]  ;;  %v412_v2 = vld [vmem:[#allocation5 + $0x80] sm:$0xff]  ;;  %v563_v3 = vld [vmem:[#allocation7 + $0x78] sm:$0xff] }
  0x56   :  { %v411_v4 = vld [vmem:[#allocation5 + $0x78] sm:$0xff]  ;;  %v562_v5 = vld [vmem:[#allocation7 + $0x70] sm:$0xff]  ;;  %v561_v7 = vld [vmem:[#allocation7 + $0x68] sm:$0xff] }
  0x57   :  { %v410_v6 = vld [vmem:[#allocation5 + $0x70] sm:$0xff]  ;;  %v409_v8 = vld [vmem:[#allocation5 + $0x68] sm:$0xff]  ;;  %v560_v9 = vld [vmem:[#allocation7 + $0x60] sm:$0xff] }
  0x58   :  { %v408_v10 = vld [vmem:[#allocation5 + $0x60] sm:$0xff]  ;;  %v559_v11 = vld [vmem:[#allocation7 + $0x58] sm:$0xff]  ;;  %v558_v13 = vld [vmem:[#allocation7 + $0x50] sm:$0xff] }
  0x59   :  { %v407_v12 = vld [vmem:[#allocation5 + $0x58] sm:$0xff]  ;;  %v406_v15 = vld [vmem:[#allocation5 + $0x50] sm:$0xff] }
  0xc8   :  { %v130_v21 = vpop.permute.xlu0 %129 }
  0xc9   :  { %vm131_vm2 = vcmp.eq.s32.totalorder %v126_v17, %v130_v21  ;;  %v557_v21 = vld [vmem:[#allocation7 + $0x48] sm:$0xff] }
  0xca   :  { %v132_v25 = vsel %vm131_vm2, 1.0, %v1303_v1  ;;  %v1472_v31 = vpop.permute.xlu1 %339 }
  0xcb   :  { %v359_v34 = vmul.f32 %v350_v23, %v1472_v31  ;;  %v360_v35 = vmul.f32 %v354_v24, %v1472_v31  ;;  %v405_v23 = vld [vmem:[#allocation5 + $0x48] sm:$0xff]  ;;  %v1483_v24 = vsub.s32 0, %v1445_v16  ;;  %v552_v16 = vld [vmem:[#allocation7 + $0x20] sm:$0xff] }
  0xcd   :  { %v139_v26 = vpop.permute.xlu0 %138  ;;  %v1476_v40 = vadd.f32 %v370_v27, %v359_v34  ;;  %v1478_v41 = vadd.f32 %v374_v28, %v360_v35  ;;  %v404_v27 = vld [vmem:[#allocation5 + $0x40] sm:$0xff]  ;;  %v555_v28 = vld [vmem:[#allocation7 + $0x38] sm:$0xff]  ;;  %v402_v34 = vld [vmem:[#allocation5 + $0x30] sm:$0xff]  ;;  %v346_v35 = vrot.slane %v1456_v20, %v1483_v24 }
  0xce   :  { %v141_v29 = vmul.f32 %v139_v26, %v132_v25  ;;  %v556_v25 = vld [vmem:[#allocation7 + $0x40] sm:$0xff] }
  0xcf   :  { %v385_v48 = vmul.f32 0.70710677, %v1476_v40  ;;  %v382_v14 = vmul.f32 0.5, %v1476_v40  ;;  %v399_v40 = vld [vmem:[#allocation5 + $0x18] sm:$0xff]  ;;  %v358_v20 = vmul.f32 %v346_v35, %v1472_v31  ;;  %v808_v35 = vld [vmem:[#allocation10 + $0x70] sm:$0xff] }
  0xd0   :  { %948 = vmatmul.mubr.msk.f32.vlgmr.msra.gmra.mxu0 %vm166_vm3, %v141_v29  ;;  %995 = vmatmul.mubr.msk.f32.vlgmr.msra.gmra.mxu1 %vm166_vm3, %v141_v29  ;;  %v554_v29 = vld [vmem:[#allocation7 + $0x30] sm:$0xff]  ;;  %v607_v31 = vld [vmem:[#allocation7 + $0x1d8] sm:$0xff] }
  0xd1   :  { %625 = vmatpush1.msra.mxu1 %v578_v30  ;;  %473 = vmatpush1.msra.mxu0 %v426_v32  ;;  %1087 = verf.f32 %v385_v48  ;;  %v403_v32 = vld [vmem:[#allocation5 + $0x38] sm:$0xff]  ;;  %v396_v48 = vld [vmem:[#allocation5] sm:$0xff] }
  0xd2   :  { %626 = vmatprep.subr.mxu1 %v577_v33  ;;  %474 = vmatprep.subr.mxu0 %v425_v36  ;;  %v553_v33 = vld [vmem:[#allocation7 + $0x28] sm:$0xff] }
  0xd3   :  { %627 = vmatpush1.msra.mxu1 %v576_v37  ;;  %475 = vmatpush1.msra.mxu0 %v424_v38  ;;  %v401_v36 = vld [vmem:[#allocation5 + $0x28] sm:$0xff]  ;;  %v551_v37 = vld [vmem:[#allocation7 + $0x18] sm:$0xff]  ;;  %v400_v38 = vld [vmem:[#allocation5 + $0x20] sm:$0xff] }
  0xd4   :  { %628 = vmatprep.subr.mxu1 %v575_v39  ;;  %476 = vmatprep.subr.mxu0 %v423_v42  ;;  %v550_v39 = vld [vmem:[#allocation7 + $0x10] sm:$0xff]  ;;  %v549_v42 = vld [vmem:[#allocation7 + $0x8] sm:$0xff] }
  0xd5   :  { %629 = vmatpush1.msra.mxu1 %v574_v43  ;;  %477 = vmatpush1.msra.mxu0 %v422_v44  ;;  %v398_v43 = vld [vmem:[#allocation5 + $0x10] sm:$0xff]  ;;  %v548_v44 = vld [vmem:[#allocation7] sm:$0xff] }
  0xd6   :  { %630 = vmatprep.subr.mxu1 %v573_v45  ;;  %478 = vmatprep.subr.mxu0 %v421_v46  ;;  %v366_v45 = vrot.slane %v1461_v22, %v1483_v24  ;;  %v397_v46 = vld [vmem:[#allocation5 + $0x8] sm:$0xff] }
  0xd7   :  { %631 = vmatpush1.msra.mxu1 %v572_v47  ;;  %479 = vmatpush1.msra.mxu0 %v420_v49  ;;  %v611_v47 = vld [vmem:[#allocation7 + $0x1f8] sm:$0xff]  ;;  %v610_v49 = vld [vmem:[#allocation7 + $0x1f0] sm:$0xff]  ;;  %v457_v22 = vld [vmem:[#allocation5 + $0x1e8] sm:$0xff] }
  0xd8   :  { %632 = vmatprep.subr.mxu1 %v571_v50  ;;  %480 = vmatprep.subr.mxu0 %v419_v51  ;;  %v459_v50 = vld [vmem:[#allocation5 + $0x1f8] sm:$0xff]  ;;  %v609_v51 = vld [vmem:[#allocation7 + $0x1e8] sm:$0xff] }
  0xd9   :  { %633 = vmatpush1.msra.mxu1 %v570_v52  ;;  %481 = vmatpush1.msra.mxu0 %v418_v53  ;;  %v458_v52 = vld [vmem:[#allocation5 + $0x1f0] sm:$0xff]  ;;  %v608_v53 = vld [vmem:[#allocation7 + $0x1e0] sm:$0xff] }
  0xda   :  { %634 = vmatprep.subr.mxu1 %v569_v54  ;;  %482 = vmatprep.subr.mxu0 %v417_v55  ;;  %v378_v54 = vadd.f32 %v366_v45, %v358_v20  ;;  %v456_v55 = vld [vmem:[#allocation5 + $0x1e0] sm:$0xff]  ;;  %v447_v45 = vld [vmem:[#allocation5 + $0x198] sm:$0xff] }
  0xdb   :  { %635 = vmatpush1.msra.mxu1 %v568_v56  ;;  %483 = vmatpush1.msra.mxu0 %v416_v57  ;;  %v606_v56 = vld [vmem:[#allocation7 + $0x1d0] sm:$0xff]  ;;  %v455_v57 = vld [vmem:[#allocation5 + $0x1d8] sm:$0xff] }
  0xdc   :  { %636 = vmatprep.subr.mxu1 %v567_v58  ;;  %484 = vmatprep.subr.mxu0 %v415_v59  ;;  %v605_v58 = vld [vmem:[#allocation7 + $0x1c8] sm:$0xff]  ;;  %v454_v59 = vld [vmem:[#allocation5 + $0x1d0] sm:$0xff]  ;;  %v805_v20 = vld [vmem:[#allocation10 + $0x58] sm:$0xff] }
  0xdd   :  { %637 = vmatpush1.msra.mxu1 %v566_v60  ;;  %485 = vmatpush1.msra.mxu0 %v414_v61  ;;  %v384_v60 = vmul.f32 0.70710677, %v378_v54  ;;  %v604_v61 = vld [vmem:[#allocation7 + $0x1c0] sm:$0xff] }
  0xde   :  { %638 = vmatprep.subr.mxu1 %v565_v62  ;;  %486 = vmatprep.subr.mxu0 %v413_v63  ;;  %v1088_v17 = vpop.eup %1087  ;;  %v453_v62 = vld [vmem:[#allocation5 + $0x1c8] sm:$0xff]  ;;  %v603_v63 = vld [vmem:[#allocation7 + $0x1b8] sm:$0xff] }
  0xdf   :  { %639 = vmatpush1.msra.mxu1 %v564_v0  ;;  %487 = vmatpush1.msra.mxu0 %v412_v2  ;;  %v391_v26 = vadd.f32 1.0, %v1088_v17  ;;  %v602_v0 = vld [vmem:[#allocation7 + $0x1b0] sm:$0xff]  ;;  %v601_v2 = vld [vmem:[#allocation7 + $0x1a8] sm:$0xff]  ;;  %1089 = verf.f32 %v384_v60  ;;  %v435_v60 = vld [vmem:[#allocation5 + $0x138] sm:$0xff] }
  0xe0   :  { %640 = vmatprep.subr.mxu1 %v563_v3  ;;  %488 = vmatprep.subr.mxu0 %v411_v4  ;;  %v600_v3 = vld [vmem:[#allocation7 + $0x1a0] sm:$0xff]  ;;  %v599_v4 = vld [vmem:[#allocation7 + $0x198] sm:$0xff] }
  0xe1   :  { %641 = vmatpush1.msra.mxu1 %v562_v5  ;;  %489 = vmatpush1.msra.mxu0 %v410_v6  ;;  %v394_v30 = vmul.f32 %v391_v26, %v382_v14  ;;  %v598_v5 = vld [vmem:[#allocation7 + $0x190] sm:$0xff]  ;;  %v597_v6 = vld [vmem:[#allocation7 + $0x188] sm:$0xff]  ;;  %v381_v26 = vmul.f32 0.5, %v378_v54  ;;  %v802_v54 = vld [vmem:[#allocation10 + $0x40] sm:$0xff] }
  0xe2   :  { %642 = vmatprep.subr.mxu1 %v561_v7  ;;  %490 = vmatprep.subr.mxu0 %v409_v8  ;;  %v596_v7 = vld [vmem:[#allocation7 + $0x180] sm:$0xff]  ;;  %v595_v8 = vld [vmem:[#allocation7 + $0x178] sm:$0xff]  ;;  %v589_v14 = vld [vmem:[#allocation7 + $0x148] sm:$0xff] }
  0xe3   :  { %643 = vmatpush1.msra.mxu1 %v560_v9  ;;  %491 = vmatpush1.msra.mxu0 %v408_v10  ;;  %v594_v9 = vld [vmem:[#allocation7 + $0x170] sm:$0xff]  ;;  %v593_v10 = vld [vmem:[#allocation7 + $0x168] sm:$0xff] }
  0xe4   :  { %644 = vmatprep.subr.mxu1 %v559_v11  ;;  %492 = vmatprep.subr.mxu0 %v407_v12  ;;  %v592_v11 = vld [vmem:[#allocation7 + $0x160] sm:$0xff]  ;;  %v591_v12 = vld [vmem:[#allocation7 + $0x158] sm:$0xff] }
  0xe5   :  { %645 = vmatpush1.msra.mxu1 %v558_v13  ;;  %493 = vmatpush1.msra.mxu0 %v406_v15  ;;  %v590_v13 = vld [vmem:[#allocation7 + $0x150] sm:$0xff]  ;;  %v588_v15 = vld [vmem:[#allocation7 + $0x140] sm:$0xff] }
  0xe6   :  { %646 = vmatprep.subr.mxu1 %v557_v21  ;;  %494 = vmatprep.subr.mxu0 %v405_v23  ;;  %v587_v21 = vld [vmem:[#allocation7 + $0x138] sm:$0xff]  ;;  %v586_v23 = vld [vmem:[#allocation7 + $0x130] sm:$0xff] }
  0xe7   :  { %647 = vmatpush1.msra.mxu1 %v556_v25  ;;  %495 = vmatpush1.msra.mxu0 %v404_v27  ;;  %v585_v25 = vld [vmem:[#allocation7 + $0x128] sm:$0xff]  ;;  %v584_v27 = vld [vmem:[#allocation7 + $0x120] sm:$0xff] }
  0xe8   :  { %648 = vmatprep.subr.mxu1 %v555_v28  ;;  %688 = vmatprep.mubr.f32.mxu1 %v394_v30  ;;  %v582_v30 = vld [vmem:[#allocation7 + $0x110] sm:$0xff] }
  0xe9   :  { %649 = vmatpush1.msra.mxu1 %v554_v29  ;;  %496 = vmatprep.subr.mxu0 %v403_v32  ;;  %v583_v29 = vld [vmem:[#allocation7 + $0x118] sm:$0xff]  ;;  %v581_v32 = vld [vmem:[#allocation7 + $0x108] sm:$0xff] }
  0xea   :  { %650 = vmatprep.subr.mxu1 %v553_v33  ;;  %497 = vmatpush1.msra.mxu0 %v402_v34  ;;  %v580_v33 = vld [vmem:[#allocation7 + $0x100] sm:$0xff] }
  0xeb   :  { %651 = vmatpush1.msra.mxu1 %v552_v16  ;;  %498 = vmatprep.subr.mxu0 %v401_v36  ;;  %v809_v16 = vld [vmem:[#allocation10 + $0x78] sm:$0xff]  ;;  %v452_v36 = vld [vmem:[#allocation5 + $0x1c0] sm:$0xff] }
  0xec   :  { %652 = vmatprep.subr.mxu1 %v551_v37  ;;  %499 = vmatpush1.msra.mxu0 %v400_v38  ;;  %v1090_v17 = vpop.eup %1089  ;;  %v451_v37 = vld [vmem:[#allocation5 + $0x1b8] sm:$0xff]  ;;  %v807_v38 = vld [vmem:[#allocation10 + $0x68] sm:$0xff] }
  0xed   :  { %653 = vmatpush1.msra.mxu1 %v550_v39  ;;  %500 = vmatprep.subr.mxu0 %v399_v40  ;;  %v390_v28 = vadd.f32 1.0, %v1090_v17  ;;  %v450_v39 = vld [vmem:[#allocation5 + $0x1b0] sm:$0xff]  ;;  %v449_v40 = vld [vmem:[#allocation5 + $0x1a8] sm:$0xff] }
  0xee   :  { %654 = vmatprep.subr.mxu1 %v549_v42  ;;  %501 = vmatpush1.msra.mxu0 %v398_v43  ;;  %v386_v42 = vmul.f32 0.70710677, %v1478_v41  ;;  %v806_v43 = vld [vmem:[#allocation10 + $0x60] sm:$0xff] }
  0xef   :  { %655 = vmatpush1.msra.mxu1 %v548_v44  ;;  %502 = vmatprep.subr.mxu0 %v397_v46  ;;  %v393_v34 = vmul.f32 %v390_v28, %v381_v26  ;;  %v448_v44 = vld [vmem:[#allocation5 + $0x1a0] sm:$0xff]  ;;  %v446_v46 = vld [vmem:[#allocation5 + $0x190] sm:$0xff] }
  0xf0   :  { %656 = vmatprep.subr.mxu1 %v611_v47  ;;  %503 = vmatpush1.msra.mxu0 %v396_v48  ;;  %v445_v47 = vld [vmem:[#allocation5 + $0x188] sm:$0xff]  ;;  %1091 = verf.f32 %v386_v42  ;;  %v804_v48 = vld [vmem:[#allocation10 + $0x50] sm:$0xff] }
  0xf1   :  { %657 = vmatpush2.msra.mxu1 %v610_v49  ;;  %504 = vmatprep.subr.mxu0 %v459_v50  ;;  %v444_v49 = vld [vmem:[#allocation5 + $0x180] sm:$0xff]  ;;  %v443_v50 = vld [vmem:[#allocation5 + $0x178] sm:$0xff]  ;;  %v714_v42 = vld [vmem:[#allocation8 + $0x70] sm:$0xff] }
  0xf2   :  { %658 = vmatprep.subr.mxu1 %v609_v51  ;;  %505 = vmatpush2.msra.mxu0 %v458_v52  ;;  %v803_v51 = vld [vmem:[#allocation10 + $0x48] sm:$0xff]  ;;  %v442_v52 = vld [vmem:[#allocation5 + $0x170] sm:$0xff] }
  0xf3   :  { %659 = vmatpush2.msra.mxu1 %v608_v53  ;;  %506 = vmatprep.subr.mxu0 %v457_v22  ;;  %v441_v53 = vld [vmem:[#allocation5 + $0x168] sm:$0xff]  ;;  %v440_v22 = vld [vmem:[#allocation5 + $0x160] sm:$0xff] }
  0xf4   :  { %660 = vmatprep.subr.mxu1 %v607_v31  ;;  %507 = vmatpush2.msra.mxu0 %v456_v55  ;;  %v439_v31 = vld [vmem:[#allocation5 + $0x158] sm:$0xff] }
  0xf5   :  { %661 = vmatpush2.msra.mxu1 %v606_v56  ;;  %508 = vmatprep.subr.mxu0 %v455_v57  ;;  %v801_v55 = vld [vmem:[#allocation10 + $0x38] sm:$0xff]  ;;  %v438_v56 = vld [vmem:[#allocation5 + $0x150] sm:$0xff]  ;;  %v437_v57 = vld [vmem:[#allocation5 + $0x148] sm:$0xff] }
  0xf6   :  { %662 = vmatprep.subr.mxu1 %v605_v58  ;;  %509 = vmatpush2.msra.mxu0 %v454_v59  ;;  %v800_v58 = vld [vmem:[#allocation10 + $0x30] sm:$0xff]  ;;  %v436_v59 = vld [vmem:[#allocation5 + $0x140] sm:$0xff] }
  0xf7   :  { %663 = vmatpush2.msra.mxu1 %v604_v61  ;;  %510 = vmatprep.subr.mxu0 %v453_v62  ;;  %v799_v61 = vld [vmem:[#allocation10 + $0x28] sm:$0xff]  ;;  %v434_v62 = vld [vmem:[#allocation5 + $0x130] sm:$0xff] }
  0xf8   :  { %664 = vmatprep.subr.mxu1 %v603_v63  ;;  %511 = vmatpush2.msra.mxu0 %v452_v36  ;;  %v433_v63 = vld [vmem:[#allocation5 + $0x128] sm:$0xff] }
  0xf9   :  { %665 = vmatpush2.msra.mxu1 %v602_v0  ;;  %512 = vmatprep.subr.mxu0 %v451_v37  ;;  %v798_v0 = vld [vmem:[#allocation10 + $0x20] sm:$0xff] }
  0xfa   :  { %666 = vmatprep.subr.mxu1 %v601_v2  ;;  %513 = vmatpush2.msra.mxu0 %v450_v39  ;;  %v432_v2 = vld [vmem:[#allocation5 + $0x120] sm:$0xff] }
  0xfb   :  { %667 = vmatpush2.msra.mxu1 %v600_v3  ;;  %514 = vmatprep.subr.mxu0 %v449_v40  ;;  %v715_v40 = vld [vmem:[#allocation8 + $0x78] sm:$0xff] }
  0xfc   :  { %668 = vmatprep.subr.mxu1 %v599_v4  ;;  %515 = vmatpush2.msra.mxu0 %v448_v44  ;;  %v431_v4 = vld [vmem:[#allocation5 + $0x118] sm:$0xff]  ;;  %v713_v44 = vld [vmem:[#allocation8 + $0x68] sm:$0xff] }
  0xfd   :  { %669 = vmatpush2.msra.mxu1 %v598_v5  ;;  %516 = vmatprep.subr.mxu0 %v447_v45  ;;  %v1092_v3 = vpop.eup %1091  ;;  %v797_v5 = vld [vmem:[#allocation10 + $0x18] sm:$0xff]  ;;  %v712_v45 = vld [vmem:[#allocation8 + $0x60] sm:$0xff] }
  0xfe   :  { %670 = vmatprep.subr.mxu1 %v597_v6  ;;  %517 = vmatpush2.msra.mxu0 %v446_v46  ;;  %v430_v6 = vld [vmem:[#allocation5 + $0x110] sm:$0xff] }
  0xff   :  { %671 = vmatpush2.msra.mxu1 %v596_v7  ;;  %518 = vmatprep.subr.mxu0 %v445_v47  ;;  %v429_v7 = vld [vmem:[#allocation5 + $0x108] sm:$0xff]  ;;  %v710_v46 = vld [vmem:[#allocation8 + $0x50] sm:$0xff] }
 0x100   :  { %672 = vmatprep.subr.mxu1 %v595_v8  ;;  %519 = vmatpush2.msra.mxu0 %v444_v49  ;;  %v428_v8 = vld [vmem:[#allocation5 + $0x100] sm:$0xff]  ;;  %v709_v47 = vld [vmem:[#allocation8 + $0x48] sm:$0xff]  ;;  %v707_v49 = vld [vmem:[#allocation8 + $0x38] sm:$0xff] }
 0x101   :  { %673 = vmatpush2.msra.mxu1 %v594_v9  ;;  %520 = vmatprep.subr.mxu0 %v443_v50  ;;  %v383_v9 = vmul.f32 0.5, %v1478_v41  ;;  %v149_v41 = vld [vmem:[%s1566_s4] sm:$0x7] }
 0x102   :  { %674 = vmatprep.subr.mxu1 %v593_v10  ;;  %521 = vmatpush2.msra.mxu0 %v442_v52  ;;  %v796_v10 = vld [vmem:[#allocation10 + $0x10] sm:$0xff]  ;;  %v162_v39 = vrot.slane %v149_v41, %v1451_v19  ;;  %v711_v19 = vld [vmem:[#allocation8 + $0x58] sm:$0xff]  ;;  %v704_v52 = vld [vmem:[#allocation8 + $0x20] sm:$0xff] }
 0x103   :  { %675 = vmatpush2.msra.mxu1 %v592_v11  ;;  %522 = vmatprep.subr.mxu0 %v441_v53  ;;  %v392_v11 = vadd.f32 1.0, %v1092_v3  ;;  %v706_v50 = vld [vmem:[#allocation8 + $0x30] sm:$0xff]  ;;  %v703_v53 = vld [vmem:[#allocation8 + $0x18] sm:$0xff] }
 0x104   :  { %676 = vmatprep.subr.mxu1 %v591_v12  ;;  %523 = vmatpush2.msra.mxu0 %v440_v22  ;;  %v795_v12 = vld [vmem:[#allocation10 + $0x8] sm:$0xff]  ;;  %v702_v22 = vld [vmem:[#allocation8 + $0x10] sm:$0xff] }
 0x105   :  { %677 = vmatpush2.msra.mxu1 %v590_v13  ;;  %524 = vmatprep.subr.mxu0 %v439_v31  ;;  %v794_v13 = vld [vmem:[#allocation10] sm:$0xff] }
 0x106   :  { %678 = vmatprep.subr.mxu1 %v589_v14  ;;  %525 = vmatpush2.msra.mxu0 %v438_v56  ;;  %v395_v14 = vmul.f32 %v392_v11, %v383_v9 }
 0x107   :  { %679 = vmatpush2.msra.mxu1 %v588_v15  ;;  %526 = vmatprep.subr.mxu0 %v437_v57  ;;  %v154_v15 = vrot.slane %v149_v41, %v1483_v24  ;;  %v700_v57 = vld [vmem:[#allocation8] sm:$0xff] }
 0x108   :  { %680 = vmatprep.subr.mxu1 %v587_v21  ;;  %527 = vmatpush2.msra.mxu0 %v436_v59  ;;  %v612_v59 = vld [vmem:[%s1572_s10] sm:$0x3]  ;;  %s1305_s10 = smov [#allocation12]  }
 0x109   :  { %681 = vmatpush2.msra.mxu1 %v586_v23  ;;  %528 = vmatprep.subr.mxu0 %v435_v60  ;;  %v158_v23 = vrot.slane %v149_v41, %v1448_v18  ;;  %v617_v60 = vrot.slane %v612_v59, %v1483_v24  ;;  %s904_s7 = sshll.u32 %s1305_s10, 4  ;;  %s905_s7 = int_to_ptr.vmem [resolvable:$true] %s904_s7 }
 0x10a   :  { %682 = vmatprep.subr.mxu1 %v585_v25  ;;  %529 = vmatpush2.msra.mxu0 %v434_v62  ;;  %s1199_s3 = scalar_lea.vmem %s905_s7, 128  ;;  %p1204_p12 = scmp.lt.s32.totalorder %s905_s7, %s905_s7 }
 0x10b   :  { %683 = vmatpush2.msra.mxu1 %v584_v27  ;;  %530 = vmatprep.subr.mxu0 %v433_v63  ;;  %p1200_p11 = scmp.ne.s32.totalorder %s905_s7, %s1199_s3  ;;  %p1205_p13 = scmp.lt.s32.totalorder %s1199_s3, %s1199_s3 }
 0x10c   :  { %684 = vmatprep.subr.mxu1 %v583_v29  ;;  %531 = vmatpush2.msra.mxu0 %v432_v2 }
 0x10d   :  { %685 = vmatpush2.msra.mxu1 %v582_v30  ;;  %532 = vmatprep.subr.mxu0 %v431_v4  ;;  %p1206_p0 = por %p1205_p13, %p1204_p12 }
 0x10e   :  { %686 = vmatprep.subr.mxu1 %v581_v32  ;;  %533 = vmatpush2.msra.mxu0 %v430_v6 }
 0x10f   :  { %687 = vmatpush2.msra.mxu1 %v580_v33  ;;  %534 = vmatprep.subr.mxu0 %v429_v7  ;;  %p1207_p1 = pnand %p1206_p0, %p1200_p11 }
 0x110   :  { %1032 = vmatprep.subr.mxu1 %v1303_v1  ;;  %689 = vmatmul.mubr.f32.vlgmr.msra.gmra.mxu1 %v393_v34 }
 0x111   :  { %1033 = vmatpush3.msra.mxu1 %v809_v16  ;;  %1064 = vmatprep.mubr.msk.f32.mxu1 %vm1304_vm1, %v1303_v1 }
 0x112   :  { %1034 = vmatprep.subr.mxu1 %v1303_v1  ;;  %535 = vmatpush2.msra.mxu0 %v428_v8 }
 0x113   :  { %1035 = vmatpush3.msra.mxu1 %v808_v35  ;;  %997 = vmatprep.subr.mxu0 %v1303_v1 }
 0x114   :  { %1036 = vmatprep.subr.mxu1 %v1303_v1 }
 0x115   :  { %1037 = vmatpush3.msra.mxu1 %v807_v38 }
 0x116   :  { %1038 = vmatprep.subr.mxu1 %v1303_v1 }
 0x117   :  { %1039 = vmatpush3.msra.mxu1 %v806_v43 }
 0x118   :  { %1040 = vmatprep.subr.mxu1 %v1303_v1 }
 0x119   :  { %1041 = vmatpush3.msra.mxu1 %v805_v20 }
 0x11a   :  { %1042 = vmatprep.subr.mxu1 %v1303_v1 }
 0x11b   :  { %1043 = vmatpush3.msra.mxu1 %v804_v48  ;;  %v708_v48 = vld [vmem:[#allocation8 + $0x40] sm:$0xff] }
 0x11c   :  { %1044 = vmatprep.subr.mxu1 %v1303_v1 }
 0x11d   :  { %1045 = vmatpush3.msra.mxu1 %v803_v51  ;;  %v705_v51 = vld [vmem:[#allocation8 + $0x28] sm:$0xff] }
 0x11e   :  { %1046 = vmatprep.subr.mxu1 %v1303_v1 }
 0x11f   :  { %1047 = vmatpush3.msra.mxu1 %v802_v54 }
 0x120   :  { %1048 = vmatprep.subr.mxu1 %v1303_v1 }
 0x121   :  { %1049 = vmatpush3.msra.mxu1 %v801_v55  ;;  %v701_v55 = vld [vmem:[#allocation8 + $0x8] sm:$0xff] }
 0x122   :  { %1050 = vmatprep.subr.mxu1 %v1303_v1 }
 0x123   :  { %1051 = vmatpush3.msra.mxu1 %v800_v58 }
 0x124   :  { %1052 = vmatprep.subr.mxu1 %v1303_v1 }
 0x125   :  { %1053 = vmatpush3.msra.mxu1 %v799_v61  ;;  %v621_v61 = vrot.slane %v612_v59, %v1448_v18 }
 0x126   :  { %1054 = vmatprep.subr.mxu1 %v1303_v1 }
 0x127   :  { %1055 = vmatpush3.msra.mxu1 %v798_v0 }
 0x128   :  { %1056 = vmatprep.subr.mxu1 %v1303_v1 }
 0x129   :  { %1057 = vmatpush3.msra.mxu1 %v797_v5 }
 0x12a   :  { %1058 = vmatprep.subr.mxu1 %v1303_v1 }
 0x12b   :  { %1059 = vmatpush3.msra.mxu1 %v796_v10 }
 0x12c   :  { %1060 = vmatprep.subr.mxu1 %v1303_v1 }
 0x12d   :  { %1061 = vmatpush3.msra.mxu1 %v795_v12 }
 0x12e   :  { %1062 = vmatprep.subr.mxu1 %v1303_v1 }
 0x12f   :  { %1063 = vmatpush3.msra.mxu1 %v794_v13 }
 0x130   :  { %1065 = vmatmul.mubr.f32.vlgmr.msra.gmra.mxu1 %v395_v14 }
 0x190   :  { %v246_v17 = vpop.f32.mrf.mxu0  ;;  %v317_v21 = vpop.f32.mrf.mxu1 }
 0x191   :  { %v247_v25 = vadd.f32 %v246_v17, %v154_v15  ;;  %v318_v43 = vadd.f32 %v317_v21, %v162_v39 }
 0x192   :  { %v248_v26 = vpop.f32.mrf.mxu0  ;;  %v996_v27 = vpop.f32.mrf.mxu1 }
 0x193   :  { %v324_v28 = vmul.f32 0.70710677, %v247_v25  ;;  %v249_v29 = vadd.f32 %v248_v26, %v158_v23  ;;  %v321_v36 = vmul.f32 0.5, %v247_v25  ;;  %v326_v20 = vmul.f32 0.70710677, %v318_v43 }
 0x194   :  { %v323_v56 = vmul.f32 0.5, %v318_v43 }
 0x195   :  { %1093 = verf.f32 %v324_v28  ;;  %v325_v30 = vmul.f32 0.70710677, %v249_v29  ;;  %v322_v16 = vmul.f32 0.5, %v249_v29 }
 0x197   :  { %1095 = verf.f32 %v325_v30 }
 0x198   :  { %1097 = verf.f32 %v326_v20 }
 0x1a2   :  { %v1094_v32 = vpop.eup %1093 }
 0x1a3   :  { %v330_v34 = vadd.f32 1.0, %v1094_v32 }
 0x1a4   :  { %v1096_v33 = vpop.eup %1095 }
 0x1a5   :  { %v331_v35 = vadd.f32 1.0, %v1096_v33  ;;  %v333_v38 = vmul.f32 %v330_v34, %v321_v36  ;;  %v1098_v54 = vpop.eup %1097 }
 0x1a6   :  { %v332_v31 = vadd.f32 1.0, %v1098_v54 }
 0x1a7   :  { %v334_v37 = vmul.f32 %v331_v35, %v322_v16 }
 0x1a8   :  { %v335_v58 = vmul.f32 %v332_v31, %v323_v56 }
 0x1a9   :  { %536 = vmatprep.mubr.f32.mxu0 %v334_v37 }
 0x1aa   :  { %537 = vmatmul.mubr.f32.vlgmr.msra.gmra.mxu0 %v333_v38 }
 0x1ab   :  { %998 = vmatpush3.msra.mxu0 %v715_v40  ;;  %1029 = vmatprep.mubr.msk.f32.mxu0 %vm1304_vm1, %v1303_v1 }
 0x1ac   :  { %999 = vmatprep.subr.mxu0 %v1303_v1 }
 0x1ad   :  { %1000 = vmatpush3.msra.mxu0 %v714_v42 }
 0x1ae   :  { %1001 = vmatprep.subr.mxu0 %v1303_v1 }
 0x1af   :  { %1002 = vmatpush3.msra.mxu0 %v713_v44 }
 0x1b0   :  { %1003 = vmatprep.subr.mxu0 %v1303_v1 }
 0x1b1   :  { %1004 = vmatpush3.msra.mxu0 %v712_v45 }
 0x1b2   :  { %1005 = vmatprep.subr.mxu0 %v1303_v1 }
 0x1b3   :  { %1006 = vmatpush3.msra.mxu0 %v711_v19 }
 0x1b4   :  { %1007 = vmatprep.subr.mxu0 %v1303_v1 }
 0x1b5   :  { %1008 = vmatpush3.msra.mxu0 %v710_v46 }
 0x1b6   :  { %1009 = vmatprep.subr.mxu0 %v1303_v1 }
 0x1b7   :  { %1010 = vmatpush3.msra.mxu0 %v709_v47 }
 0x1b8   :  { %1011 = vmatprep.subr.mxu0 %v1303_v1 }
 0x1b9   :  { %1012 = vmatpush3.msra.mxu0 %v708_v48 }
 0x1ba   :  { %1013 = vmatprep.subr.mxu0 %v1303_v1 }
 0x1bb   :  { %1014 = vmatpush3.msra.mxu0 %v707_v49 }
 0x1bc   :  { %1015 = vmatprep.subr.mxu0 %v1303_v1 }
 0x1bd   :  { %1016 = vmatpush3.msra.mxu0 %v706_v50 }
 0x1be   :  { %1017 = vmatprep.subr.mxu0 %v1303_v1 }
 0x1bf   :  { %1018 = vmatpush3.msra.mxu0 %v705_v51 }
 0x1c0   :  { %1019 = vmatprep.subr.mxu0 %v1303_v1 }
 0x1c1   :  { %1020 = vmatpush3.msra.mxu0 %v704_v52 }
 0x1c2   :  { %1021 = vmatprep.subr.mxu0 %v1303_v1 }
 0x1c3   :  { %1022 = vmatpush3.msra.mxu0 %v703_v53 }
 0x1c4   :  { %1023 = vmatprep.subr.mxu0 %v1303_v1 }
 0x1c5   :  { %1024 = vmatpush3.msra.mxu0 %v702_v22 }
 0x1c6   :  { %1025 = vmatprep.subr.mxu0 %v1303_v1 }
 0x1c7   :  { %1026 = vmatpush3.msra.mxu0 %v701_v55 }
 0x1c8   :  { %1027 = vmatprep.subr.mxu0 %v1303_v1  ;;  %v952_v1 = vld [vmem:[%s1576_s14] ss:$0 sm:$0xff] }
 0x1c9   :  { %1028 = vmatpush3.msra.mxu0 %v700_v57 }
 0x1ca   :  { %1030 = vmatmul.mubr.f32.vlgmr.msra.gmra.mxu0 %v335_v58 }
 0x1d0   :  { %v690_v62 = vpop.f32.mrf.mxu1 }
 0x1d1   :  { %v691_v63 = vadd.f32 %v690_v62, %v617_v60 }
 0x1d2   :  { %v692_v0 = vpop.f32.mrf.mxu1 }
 0x1d3   :  { %v693_v2 = vadd.f32 %v692_v0, %v621_v61 }
 0x1d5   :  { %v697_v3 = vcombine.low %v691_v63, %v693_v2 }
 0x1d7   :  { %699 = vst [vmem:[#allocation12] sm:$0xff] %v697_v3 }
 0x1f0   :  { %v883_v4 = vpop.f32.mrf.mxu1 }
 0x1f1   :  { %v884_v5 = vadd.f32 %v952_v1, %v883_v4 }
 0x1f2   :  { %v1066_v6 = vpop.f32.mrf.mxu1 }
 0x1f3   :  { %887 = vst [vmem:[#allocation15] sm:$0xf] %v884_v5 }
 0x1f4   :  { %1210 = shalt.err (!%p1207_p1)
}
 0x1f5   :  { %907 = dma.vmem_to_hbm [thread:$0]  %s905_s7, 128, %s1578_s16, [#allocation13]  }
 0x1f6   :  { %s1306_s9 = smov [#allocation15]  }
 0x1f7   :  { %s924_s14 = sshll.u32 %s1306_s9, 4  ;;  %s925_s14 = int_to_ptr.vmem [resolvable:$true] %s924_s14 }
 0x1f8   :  { %s1219_s30 = scalar_lea.vmem %s925_s14, 64  ;;  %p1224_p3 = scmp.lt.s32.totalorder %s925_s14, %s925_s14 }
 0x1f9   :  { %p1220_p2 = scmp.ne.s32.totalorder %s925_s14, %s1219_s30  ;;  %p1225_p4 = scmp.lt.s32.totalorder %s1219_s30, %s1219_s30 }
 0x1fb   :  { %p1226_p5 = por %p1225_p4, %p1224_p3 }
 0x1fd   :  { %p1227_p6 = pnand %p1226_p5, %p1220_p2 }
 0x1ff   :  { %1230 = shalt.err (!%p1227_p6)
}
 0x200   :  { %927 = dma.vmem_to_hbm [thread:$0]  %s925_s14, 64, %s1580_s18, [#allocation16]   ;;  %v460_v7 = vld [vmem:[%s1570_s8] sm:$0x3] }
 0x201   :  { %v465_v8 = vrot.slane %v460_v7, %v1483_v24  ;;  %v469_v9 = vrot.slane %v460_v7, %v1448_v18  ;;  %s1307_s16 = smov [#allocation11]  }
 0x202   :  { %s894_s28 = sshll.u32 %s1307_s16, 4  ;;  %s895_s28 = int_to_ptr.vmem [resolvable:$true] %s894_s28 }
 0x203   :  { %s1239_s29 = scalar_lea.vmem %s895_s28, 128  ;;  %p1244_p8 = scmp.lt.s32.totalorder %s895_s28, %s895_s28 }
 0x204   :  { %p1240_p7 = scmp.ne.s32.totalorder %s895_s28, %s1239_s29  ;;  %p1245_p9 = scmp.lt.s32.totalorder %s1239_s29, %s1239_s29 }
 0x206   :  { %p1246_p10 = por %p1245_p9, %p1244_p8 }
 0x208   :  { %p1247_p11 = pnand %p1246_p10, %p1240_p7 }
 0x26a   :  { %v538_v10 = vpop.f32.mrf.mxu0 }
 0x26b   :  { %v539_v12 = vadd.f32 %v538_v10, %v465_v8 }
 0x26c   :  { %v540_v11 = vpop.f32.mrf.mxu0 }
 0x26d   :  { %v541_v13 = vadd.f32 %v540_v11, %v469_v9 }
 0x26f   :  { %v545_v14 = vcombine.low %v539_v12, %v541_v13 }
 0x271   :  { %547 = vst [vmem:[#allocation11] sm:$0xff] %v545_v14 }
 0x272   :  { %1250 = shalt.err (!%p1247_p11)
}
 0x273   :  { %897 = dma.vmem_to_hbm [thread:$0]  %s895_s28, 128, %s1577_s15, [#allocation4]   ;;  %v951_v18 = vld [vmem:[%s1574_s12] ss:$0 sm:$0xff] }
 0x274   :  { %s1308_s20 = smov [#allocation14]  }
 0x275   :  { %s914_s22 = sshll.u32 %s1308_s20, 4  ;;  %s915_s22 = int_to_ptr.vmem [resolvable:$true] %s914_s22 }
 0x276   :  { %s1259_s11 = scalar_lea.vmem %s915_s22, 64  ;;  %p1264_p13 = scmp.lt.s32.totalorder %s915_s22, %s915_s22 }
 0x277   :  { %p1260_p12 = scmp.ne.s32.totalorder %s915_s22, %s1259_s11  ;;  %p1265_p0 = scmp.lt.s32.totalorder %s1259_s11, %s1259_s11 }
 0x279   :  { %p1266_p1 = por %p1265_p0, %p1264_p13 }
 0x27b   :  { %p1267_p2 = pnand %p1266_p1, %p1260_p12 }
 0x28a   :  { %v789_v24 = vpop.f32.mrf.mxu0 }
 0x28b   :  { %v790_v41 = vadd.f32 %v951_v18, %v789_v24 }
 0x28c   :  { %v1031_v15 = vpop.f32.mrf.mxu0 }
 0x28d   :  { %793 = vst [vmem:[#allocation14] sm:$0xf] %v790_v41 }
 0x28e   :  { %1270 = shalt.err (!%p1267_p2)
}
 0x28f   :  { %917 = dma.vmem_to_hbm [thread:$0]  %s915_s22, 64, %s1579_s17, [#allocation13]  }
 0x290   :  { %1285 = dma.done.wait [#allocation4], 128  }
 0x291   :  { %1286 = vsyncadd [#allocation4], 4294967168 }
 0x292   :  { %1287 = dma.done.wait [#allocation13], 192  }
 0x293   :  { %1288 = vsyncadd [#allocation13], 4294967104 }
 0x294   :  { %1289 = dma.done.wait [#allocation16], 64  }
 0x295   :  { %1290 = vsyncadd [#allocation16], 4294967232 }
 0x296   :  { %940 = vsyncpa [#allocation3], 1 }
 0x297   :  { %941 = vsyncpa [#allocation6], 1 }
 0x298   :  { %942 = vsyncpa [#allocation9], 1 }
 0x299   :  { %943 = vsyncpa [#allocation4], 1 }
 0x29a   :  { %944 = vsyncpa [#allocation13], 1 }
 0x29b   :  { %945 = vsyncpa [#allocation16], 1 }

</bundles_post_ra>
